<compile_context>
chip_gen: v6e
topology: v6e:2x2x1
jax: 0.10.0
libtpu: 0.0.40
codegen_flags: <defaults>
</compile_context>

<pallas_src>
import jax
import jax.numpy as jnp
from jax.experimental import pallas as pl
from jax.experimental.pallas import tpu as pltpu

_SUBLANE = 8


def ae_kernel(x_ref, w1t_ref, b1_ref, w2r_ref, b2_ref, w3r_ref, b3_ref,
              w4t_ref, b4_ref, feat_ref, enc_ref, dec_ref):
    # Cast under the DMA shadow (no-op when weight_dtype == f32).
    x = x_ref[...].astype(w1t_ref.dtype)

    # encoder: Linear(input, hidden) + Tanh  -> MXU matmul, f32 accumulation.
    feature = jnp.tanh(
        jnp.dot(x, w1t_ref[...], preferred_element_type=jnp.float32)
        + b1_ref[...]
    )
    feat_ref[...] = feature

    # encoder2: Linear(hidden, 1) -> VPU/XLU reduce (an N=1 matmul would waste
    # the MXU).  Exact (tb, 1) store; no lane-dense slab.
    encoded = jnp.sum(feature * w2r_ref[...], axis=-1, keepdims=True) + b2_ref[0]
    enc_ref[...] = encoded

    # decoder Linear(1, hidden) + Tanh -> VPU broadcast-multiply (K=1 matmul
    # would also waste the MXU).
    h = jnp.tanh(encoded * w3r_ref[...] + b3_ref[...])

    # decoder Linear(hidden, output) -> MXU matmul, f32 accumulation.
    dec_ref[...] = (
        jnp.dot(h.astype(w4t_ref.dtype), w4t_ref[...],
                preferred_element_type=jnp.float32)
        + b4_ref[...]
    )


def _round_up(x, m):
    return ((x + m - 1) // m) * m


def _vmem_capacity_bytes():
    """Chip VMEM capacity; falls back to a v7x-conservative 64 MiB."""
    try:
        info = pltpu.get_tpu_info()
        cap = getattr(info, "vmem_capacity_bytes", None)
        if cap:
            return int(cap)
    except Exception:
        pass
    return 64 << 20


def _pick_block_b(in_sz, hidden, out_sz, w_bytes, budget_bytes, max_bb=2048):
    """Largest batch tile whose (double-buffered) VMEM footprint fits the budget."""
    # Resident weights/biases, counted double-buffered (conservative).
    fixed = 2 * (w_bytes * (in_sz * hidden + hidden * out_sz)
                 + 4 * (4 * hidden + out_sz))
    # Per batch row, double-buffered: f32 x tile + 3 exact-size f32 outputs.
    per_row = 2 * 4 * (in_sz + hidden + 1 + out_sz)
    tb = max_bb
    while tb > _SUBLANE and fixed + tb * per_row > budget_bytes:
        tb //= 2
    return max(_SUBLANE, tb)


def _tile_row(i):
    return (i, 0)


def _fixed(i):
    return (0, 0)


def ae_forward(x, params, *, weight_dtype=jnp.float32, block_b=None):
    """x: [B, input_size] float32. params: PyTorch-convention weights/biases.

    weight_dtype=jnp.bfloat16 feeds bf16 operands to the two real matmuls
    (f32 accumulation, x cast in-kernel); elementwise math stays f32.
    """
    B, in_sz = x.shape
    hidden = params["w1"].shape[0]
    out_sz = params["w4"].shape[0]

    vmem_cap = _vmem_capacity_bytes()
    budget = (vmem_cap * 3) // 5                       # pipelined-buffer budget
    vmem_limit = min(vmem_cap - (8 << 20), (vmem_cap * 3) // 4)

    w_bytes = jnp.dtype(weight_dtype).itemsize
    if block_b is None:
        block_b = _pick_block_b(in_sz, hidden, out_sz, w_bytes, budget)
    tb = min(_round_up(B, _SUBLANE), _round_up(block_b, _SUBLANE))
    B_p = _round_up(B, tb)
    grid = (B_p // tb,)

    # Weights pre-transposed to their exact shapes; biases as [1, N] rows;
    # b2 as an SMEM scalar.  No feature-dim padding anywhere.
    w1t = params["w1"].T.astype(weight_dtype)                 # (in_sz, hidden)
    b1 = params["b1"].reshape(1, -1).astype(jnp.float32)      # (1, hidden)
    w2r = params["w2"].reshape(1, -1).astype(jnp.float32)     # (1, hidden)
    b2 = params["b2"].reshape(1).astype(jnp.float32)          # (1,) in SMEM
    w3r = params["w3"].reshape(1, -1).astype(jnp.float32)     # (1, hidden)
    b3 = params["b3"].reshape(1, -1).astype(jnp.float32)      # (1, hidden)
    w4t = params["w4"].T.astype(weight_dtype)                 # (hidden, out_sz)
    b4 = params["b4"].reshape(1, -1).astype(jnp.float32)      # (1, out_sz)

    # Pad batch rows only (and only if needed); x stays f32 in HBM.
    x_p = x if B_p == B else jnp.pad(x, ((0, B_p - B), (0, 0)))

    in_specs = [
        pl.BlockSpec((tb, in_sz), _tile_row),                 # x tile
        pl.BlockSpec((in_sz, hidden), _fixed),                # W1^T (resident)
        pl.BlockSpec((1, hidden), _fixed),                    # b1
        pl.BlockSpec((1, hidden), _fixed),                    # w2 row (VPU path)
        pl.BlockSpec(memory_space=pltpu.MemorySpace.SMEM),    # b2 scalar
        pl.BlockSpec((1, hidden), _fixed),                    # w3 row (VPU path)
        pl.BlockSpec((1, hidden), _fixed),                    # b3
        pl.BlockSpec((hidden, out_sz), _fixed),               # W4^T (resident)
        pl.BlockSpec((1, out_sz), _fixed),                    # b4
    ]
    out_specs = (
        pl.BlockSpec((tb, hidden), _tile_row),
        pl.BlockSpec((tb, 1), _tile_row),
        pl.BlockSpec((tb, out_sz), _tile_row),
    )
    out_shape = (
        jax.ShapeDtypeStruct((B_p, hidden), jnp.float32),     # feature
        jax.ShapeDtypeStruct((B_p, 1), jnp.float32),          # encoded
        jax.ShapeDtypeStruct((B_p, out_sz), jnp.float32),     # decoded
    )

    feat_p, enc_p, dec_p = pl.pallas_call(
        ae_kernel,
        out_shape=out_shape,
        grid=grid,
        in_specs=in_specs,
        out_specs=out_specs,
        compiler_params=pltpu.CompilerParams(
            dimension_semantics=("parallel",),
            vmem_limit_bytes=int(vmem_limit),
        ),
    )(x_p, w1t, b1, w2r, b2, w3r, b3, w4t, b4)

    if B_p != B:
        feat_p, enc_p, dec_p = feat_p[:B], enc_p[:B], dec_p[:B]
    return feat_p, enc_p, dec_p


def init_params(key, input_size, hidden_size, output_size):
    ks = jax.random.split(key, 8)

    def lin(kw, kb, fan_in, fan_out):
        bound = 1.0 / jnp.sqrt(fan_in)
        w = jax.random.uniform(kw, (fan_out, fan_in), jnp.float32, -bound, bound)
        b = jax.random.uniform(kb, (fan_out,), jnp.float32, -bound, bound)
        return w, b

    w1, b1 = lin(ks[0], ks[1], input_size, hidden_size)   # encoder Linear
    w2, b2 = lin(ks[2], ks[3], hidden_size, 1)            # encoder2
    w3, b3 = lin(ks[4], ks[5], 1, hidden_size)            # decoder Linear 1
    w4, b4 = lin(ks[6], ks[7], hidden_size, output_size)  # decoder Linear 2
    return dict(w1=w1, b1=b1, w2=w2, b2=b2, w3=w3, b3=b3, w4=w4, b4=b4)


def ae_reference(x, p):
    feature = jnp.tanh(x @ p["w1"].T + p["b1"])
    encoded = feature @ p["w2"].T + p["b2"]
    h = jnp.tanh(encoded @ p["w3"].T + p["b3"])
    decoded = h @ p["w4"].T + p["b4"]
    return feature, encoded, decoded


if __name__ == "__main__":
    key = jax.random.PRNGKey(0)
    kx, kp, kx2 = jax.random.split(key, 3)

    input_size, hidden_size, output_size = 16, 32, 16
    params = init_params(kp, input_size, hidden_size, output_size)

    # Small batch, single grid step, f32 matmuls -> tight tolerance.
    x = jax.random.normal(kx, (8, input_size), jnp.float32)
    outs = ae_forward(x, params)
    jax.block_until_ready(outs)
    refs = ae_reference(x, params)
    for o, r in zip(outs, refs):
        assert o.shape == r.shape
        assert jnp.allclose(o, r, atol=1e-5, rtol=1e-5)

    # Ragged batch -> multi-step pipelined batch grid (row padding only) and
    # the bf16 matmul path (x cast in-kernel, f32 accum) -> loose tolerance.
    x2 = jax.random.normal(kx2, (40, input_size), jnp.float32)
    outs2 = ae_forward(x2, params, weight_dtype=jnp.bfloat16, block_b=16)
    jax.block_until_ready(outs2)
    refs2 = ae_reference(x2, params)
    for o, r in zip(outs2, refs2):
        assert o.shape == r.shape
        assert jnp.allclose(o, r, atol=5e-2, rtol=5e-2)

    print("KERNEL_OK")
</pallas_src>

<mosaic_0001>
module attributes {stable_mosaic.version = 11 : i64} {
  func.func @ae_kernel(%arg0: i32, %arg1: memref<8x16xf32, #tpu.memory_space<vmem>>, %arg2: memref<16x32xf32, #tpu.memory_space<vmem>>, %arg3: memref<1x32xf32, #tpu.memory_space<vmem>>, %arg4: memref<1x32xf32, #tpu.memory_space<vmem>>, %arg5: memref<1xf32, #tpu.memory_space<smem>>, %arg6: memref<1x32xf32, #tpu.memory_space<vmem>>, %arg7: memref<1x32xf32, #tpu.memory_space<vmem>>, %arg8: memref<32x16xf32, #tpu.memory_space<vmem>>, %arg9: memref<1x16xf32, #tpu.memory_space<vmem>>, %arg10: memref<8x32xf32, #tpu.memory_space<vmem>>, %arg11: memref<8x1xf32, #tpu.memory_space<vmem>>, %arg12: memref<8x16xf32, #tpu.memory_space<vmem>>) attributes {dimension_semantics = [#tpu.dimension_semantics<parallel>], iteration_bounds = array<i64: 1>, scalar_prefetch = 0 : i64, scratch_operands = 0 : i64, tpu.core_type = #tpu.core_type<tc>, window_params = [{transform_indices = @transform_0, window_bounds = array<i64: 8, 16>}, {pipeline_mode = #tpu.pipeline_mode<synchronous>, transform_indices = @transform_1, window_bounds = array<i64: 16, 32>}, {pipeline_mode = #tpu.pipeline_mode<synchronous>, transform_indices = @transform_2, window_bounds = array<i64: 1, 32>}, {pipeline_mode = #tpu.pipeline_mode<synchronous>, transform_indices = @transform_3, window_bounds = array<i64: 1, 32>}, {transform_indices = @transform_4, window_bounds = array<i64: 1>}, {pipeline_mode = #tpu.pipeline_mode<synchronous>, transform_indices = @transform_5, window_bounds = array<i64: 1, 32>}, {pipeline_mode = #tpu.pipeline_mode<synchronous>, transform_indices = @transform_6, window_bounds = array<i64: 1, 32>}, {pipeline_mode = #tpu.pipeline_mode<synchronous>, transform_indices = @transform_7, window_bounds = array<i64: 32, 16>}, {pipeline_mode = #tpu.pipeline_mode<synchronous>, transform_indices = @transform_8, window_bounds = array<i64: 1, 16>}, {transform_indices = @transform_9, window_bounds = array<i64: 8, 32>}, {transform_indices = @transform_10, window_bounds = array<i64: 8, 1>}, {transform_indices = @transform_11, window_bounds = array<i64: 8, 16>}]} {
    %c0 = arith.constant 0 : index
    %c0_0 = arith.constant 0 : index
    %0 = vector.load %arg1[%c0, %c0_0] : memref<8x16xf32, #tpu.memory_space<vmem>>, vector<8x16xf32>
    %c0_1 = arith.constant 0 : index
    %c0_2 = arith.constant 0 : index
    %1 = vector.load %arg2[%c0_1, %c0_2] : memref<16x32xf32, #tpu.memory_space<vmem>>, vector<16x32xf32>
    %cst = arith.constant dense<0.000000e+00> : vector<8x32xf32>
    %2 = tpu.matmul %0, %1, %cst {dimension_numbers = #tpu.dot_dimension_numbers<[1], [0], [0], [1], [0, 0, 1, 1], [], []>} : vector<8x16xf32>, vector<16x32xf32>, vector<8x32xf32> -> vector<8x32xf32>
    %c0_3 = arith.constant 0 : index
    %c0_4 = arith.constant 0 : index
    %3 = vector.load %arg3[%c0_3, %c0_4] : memref<1x32xf32, #tpu.memory_space<vmem>>, vector<1x32xf32>
    %4 = vector.broadcast %3 : vector<1x32xf32> to vector<8x32xf32>
    %5 = arith.addf %2, %4 : vector<8x32xf32>
    %6 = math.tanh %5 : vector<8x32xf32>
    %c0_5 = arith.constant 0 : index
    %c0_6 = arith.constant 0 : index
    %7 = vector.load %arg10[%c0_5, %c0_6] : memref<8x32xf32, #tpu.memory_space<vmem>>, vector<8x32xf32>
    tpu.vector_store %arg10[%c0_5, %c0_6], %6 {strides = array<i32>} : memref<8x32xf32, #tpu.memory_space<vmem>>, vector<8x32xf32>,
    %c0_7 = arith.constant 0 : index
    %c0_8 = arith.constant 0 : index
    %8 = vector.load %arg4[%c0_7, %c0_8] : memref<1x32xf32, #tpu.memory_space<vmem>>, vector<1x32xf32>
    %9 = vector.broadcast %8 : vector<1x32xf32> to vector<8x32xf32>
    %10 = arith.mulf %6, %9 : vector<8x32xf32>
    %cst_9 = arith.constant dense<0.000000e+00> : vector<8xf32>
    %11 = vector.multi_reduction <add>, %10, %cst_9 [1] : vector<8x32xf32> to vector<8xf32>
    %12 = vector.shape_cast %11 : vector<8xf32> to vector<8x1xf32>
    %c0_10 = arith.constant 0 : index
    %13 = memref.load %arg5[%c0_10] : memref<1xf32, #tpu.memory_space<smem>>
    %14 = vector.broadcast %13 : f32 to vector<8x1xf32>
    %15 = arith.addf %12, %14 : vector<8x1xf32>
    %c0_11 = arith.constant 0 : index
    %c0_12 = arith.constant 0 : index
    %16 = vector.load %arg11[%c0_11, %c0_12] : memref<8x1xf32, #tpu.memory_space<vmem>>, vector<8x1xf32>
    tpu.vector_store %arg11[%c0_11, %c0_12], %15 {strides = array<i32>} : memref<8x1xf32, #tpu.memory_space<vmem>>, vector<8x1xf32>,
    %c0_13 = arith.constant 0 : index
    %c0_14 = arith.constant 0 : index
    %17 = vector.load %arg6[%c0_13, %c0_14] : memref<1x32xf32, #tpu.memory_space<vmem>>, vector<1x32xf32>
    %18 = vector.broadcast %15 : vector<8x1xf32> to vector<8x32xf32>
    %19 = vector.broadcast %17 : vector<1x32xf32> to vector<8x32xf32>
    %20 = arith.mulf %18, %19 : vector<8x32xf32>
    %c0_15 = arith.constant 0 : index
    %c0_16 = arith.constant 0 : index
    %21 = vector.load %arg7[%c0_15, %c0_16] : memref<1x32xf32, #tpu.memory_space<vmem>>, vector<1x32xf32>
    %22 = vector.broadcast %21 : vector<1x32xf32> to vector<8x32xf32>
    %23 = arith.addf %20, %22 : vector<8x32xf32>
    %24 = math.tanh %23 : vector<8x32xf32>
    %c0_17 = arith.constant 0 : index
    %c0_18 = arith.constant 0 : index
    %25 = vector.load %arg8[%c0_17, %c0_18] : memref<32x16xf32, #tpu.memory_space<vmem>>, vector<32x16xf32>
    %cst_19 = arith.constant dense<0.000000e+00> : vector<8x16xf32>
    %26 = tpu.matmul %24, %25, %cst_19 {dimension_numbers = #tpu.dot_dimension_numbers<[1], [0], [0], [1], [0, 0, 1, 1], [], []>} : vector<8x32xf32>, vector<32x16xf32>, vector<8x16xf32> -> vector<8x16xf32>
    %c0_20 = arith.constant 0 : index
    %c0_21 = arith.constant 0 : index
    %27 = vector.load %arg9[%c0_20, %c0_21] : memref<1x16xf32, #tpu.memory_space<vmem>>, vector<1x16xf32>
    %28 = vector.broadcast %27 : vector<1x16xf32> to vector<8x16xf32>
    %29 = arith.addf %26, %28 : vector<8x16xf32>
    %c0_22 = arith.constant 0 : index
    %c0_23 = arith.constant 0 : index
    %30 = vector.load %arg12[%c0_22, %c0_23] : memref<8x16xf32, #tpu.memory_space<vmem>>, vector<8x16xf32>
    tpu.vector_store %arg12[%c0_22, %c0_23], %29 {strides = array<i32>} : memref<8x16xf32, #tpu.memory_space<vmem>>, vector<8x16xf32>,
    return
  }
  func.func @transform_0(%arg0: i32) -> (i32, i32) {
    %c0_i32 = arith.constant 0 : i32
    %c0_i32_0 = arith.constant 0 : i32
    return %arg0, %c0_i32 : i32, i32
  }
  func.func @transform_1(%arg0: i32) -> (i32, i32) {
    %c0_i32 = arith.constant 0 : i32
    %c0_i32_0 = arith.constant 0 : i32
    %c0_i32_1 = arith.constant 0 : i32
    return %c0_i32, %c0_i32_0 : i32, i32
  }
  func.func @transform_2(%arg0: i32) -> (i32, i32) {
    %c0_i32 = arith.constant 0 : i32
    %c0_i32_0 = arith.constant 0 : i32
    %c0_i32_1 = arith.constant 0 : i32
    return %c0_i32, %c0_i32_0 : i32, i32
  }
  func.func @transform_3(%arg0: i32) -> (i32, i32) {
    %c0_i32 = arith.constant 0 : i32
    %c0_i32_0 = arith.constant 0 : i32
    %c0_i32_1 = arith.constant 0 : i32
    return %c0_i32, %c0_i32_0 : i32, i32
  }
  func.func @transform_4(%arg0: i32) -> i32 {
    %c0_i32 = arith.constant 0 : i32
    %c0_i32_0 = arith.constant 0 : i32
    return %c0_i32 : i32
  }
  func.func @transform_5(%arg0: i32) -> (i32, i32) {
    %c0_i32 = arith.constant 0 : i32
    %c0_i32_0 = arith.constant 0 : i32
    %c0_i32_1 = arith.constant 0 : i32
    return %c0_i32, %c0_i32_0 : i32, i32
  }
  func.func @transform_6(%arg0: i32) -> (i32, i32) {
    %c0_i32 = arith.constant 0 : i32
    %c0_i32_0 = arith.constant 0 : i32
    %c0_i32_1 = arith.constant 0 : i32
    return %c0_i32, %c0_i32_0 : i32, i32
  }
  func.func @transform_7(%arg0: i32) -> (i32, i32) {
    %c0_i32 = arith.constant 0 : i32
    %c0_i32_0 = arith.constant 0 : i32
    %c0_i32_1 = arith.constant 0 : i32
    return %c0_i32, %c0_i32_0 : i32, i32
  }
  func.func @transform_8(%arg0: i32) -> (i32, i32) {
    %c0_i32 = arith.constant 0 : i32
    %c0_i32_0 = arith.constant 0 : i32
    %c0_i32_1 = arith.constant 0 : i32
    return %c0_i32, %c0_i32_0 : i32, i32
  }
  func.func @transform_9(%arg0: i32) -> (i32, i32) {
    %c0_i32 = arith.constant 0 : i32
    %c0_i32_0 = arith.constant 0 : i32
    return %arg0, %c0_i32 : i32, i32
  }
  func.func @transform_10(%arg0: i32) -> (i32, i32) {
    %c0_i32 = arith.constant 0 : i32
    %c0_i32_0 = arith.constant 0 : i32
    return %arg0, %c0_i32 : i32, i32
  }
  func.func @transform_11(%arg0: i32) -> (i32, i32) {
    %c0_i32 = arith.constant 0 : i32
    %c0_i32_0 = arith.constant 0 : i32
    return %arg0, %c0_i32 : i32, i32
  }
}

</mosaic_0001>

<bundles_post_ra>
// kernel: tpu_custom_call.1
= control target key start
LH: loop header
LB: loop body
LE: loop exit
PB: predicated region body
PF: predicated region fallthrough
CT: control target
= control target key end

     0   :  { %18 = vsyncpa [#allocation4], 0  ;;  %v360_v1 = vmov 0.0   ;;  %vm361_vm0 = vmmov 0   ;;  %s477_s0 = inlined_call_operand.vmem [shape: f32[8,16], index: 0, kind: input, shape index: {}]   ;;  %s478_s1 = inlined_call_operand.vmem [shape: f32[16,32], index: 1, kind: input, shape index: {}]   ;;  %s479_s2 = inlined_call_operand.vmem [shape: f32[1,32], index: 2, kind: input, shape index: {}]   ;;  %s480_s3 = inlined_call_operand.vmem [shape: f32[1,32], index: 3, kind: input, shape index: {}]   ;;  %s481_s4 = inlined_call_operand.<no memory space> [shape: f32[1], index: 4, kind: input, shape index: {}]   ;;  %s482_s5 = inlined_call_operand.vmem [shape: f32[1,32], index: 5, kind: input, shape index: {}]   ;;  %s483_s6 = inlined_call_operand.vmem [shape: f32[1,32], index: 6, kind: input, shape index: {}]   ;;  %s484_s7 = inlined_call_operand.vmem [shape: f32[32,16], index: 7, kind: input, shape index: {}]   ;;  %s485_s8 = inlined_call_operand.vmem [shape: f32[1,16], index: 8, kind: input, shape index: {}]   ;;  %s486_s9 = inlined_call_operand.hbm [shape: f32[8,32], index: 9, kind: output, shape index: {0}]   ;;  %s487_s10 = inlined_call_operand.vmem [shape: f32[8,1], index: 10, kind: output, shape index: {1}]   ;;  %s488_s11 = inlined_call_operand.hbm [shape: f32[8,16], index: 11, kind: output, shape index: {2}]  }
   0x1   :  { %v40_v0 = vld [vmem:[%s478_s1 + $0x8] sm:$0xff]  ;;  %290 = vmatprep.subr.mxu0 %v360_v1  ;;  %v39_v2 = vld [vmem:[%s478_s1] sm:$0xff]  ;;  %294 = vmatprep.mubr.msk.f32.mxu0 %vm361_vm0, %v360_v1 }
   0x2   :  { %19 = vsyncpa [#allocation6], 0  ;;  %291 = vmatpush3.msra.mxu0 %v40_v0  ;;  %v38_v3 = vld [vmem:[%s477_s0] sm:$0xff]  ;;  %vm48_vm1 = vcmask 130048   ;;  %297 = vmatprep.subr.mxu1 %v360_v1  ;;  %vm123_vm2 = vcmask 261120   ;;  %v161_v12 = vld [vmem:[%s484_s7 + $0x18] sm:$0xff]  ;;  %v137_v16 = vstv %s481_s4 }
   0x3   :  { %292 = vmatprep.subr.mxu0 %v360_v1  ;;  %305 = vmatprep.mubr.msk.f32.mxu1 %vm361_vm0, %v360_v1  ;;  %v275_v4 = vld [vmem:[%s479_s2] ss:$0 sm:$0xff]  ;;  %v160_v13 = vld [vmem:[%s484_s7 + $0x10] sm:$0xff]  ;;  %v159_v14 = vld [vmem:[%s484_s7 + $0x8] sm:$0xff]  ;;  %vm139_vm3 = vcmask 7168   ;;  %s362_s4 = smov [#allocation3]  }
   0x4   :  { %293 = vmatpush3.msra.mxu0 %v39_v2  ;;  %v277_v8 = vld [vmem:[%s480_s3] ss:$0 sm:$0xff]  ;;  %298 = vmatpush3.msra.mxu1 %v161_v12  ;;  %s249_s19 = sshll.u32 %s362_s4, 4  ;;  %s250_s19 = int_to_ptr.vmem [resolvable:$true] %s249_s19 }
   0x5   :  { %295 = vmatmul.mubr.msk.f32.vlgmr.msra.gmra.mxu0 %vm48_vm1, %v38_v3  ;;  %299 = vmatprep.subr.mxu1 %v360_v1  ;;  %v158_v15 = vld [vmem:[%s484_s7] sm:$0xff]  ;;  %s316_s20 = scalar_lea.vmem %s250_s19, 128  ;;  %p321_p1 = scmp.lt.s32.totalorder %s250_s19, %s250_s19 }
   0x6   :  { %300 = vmatpush3.msra.mxu1 %v160_v13  ;;  %v278_v18 = vld [vmem:[%s482_s5] ss:$0 sm:$0xff]  ;;  %p317_p0 = scmp.ne.s32.totalorder %s250_s19, %s316_s20  ;;  %p322_p2 = scmp.lt.s32.totalorder %s316_s20, %s316_s20 }
   0x7   :  { %301 = vmatprep.subr.mxu1 %v360_v1  ;;  %v279_v20 = vld [vmem:[%s483_s6] ss:$0 sm:$0xff] }
   0x8   :  { %302 = vmatpush3.msra.mxu1 %v159_v14  ;;  %p323_p3 = por %p322_p2, %p321_p1 }
   0x9   :  { %303 = vmatprep.subr.mxu1 %v360_v1 }
   0xa   :  { %304 = vmatpush3.msra.mxu1 %v158_v15  ;;  %p324_p4 = pnand %p323_p3, %p317_p0 }
  0xc5   :  { %v118_v5 = vpop.f32.mrf.mxu0 }
  0xc6   :  { %v119_v6 = vadd.f32 %v275_v4, %v118_v5 }
  0xc7   :  { %v296_v7 = vpop.f32.mrf.mxu0 }
  0xc8   :  { %312 = vtanh.f32 %v119_v6 }
  0xd5   :  { %v313_v9 = vpop.eup %312 }
  0xd6   :  { %v132_v10 = vmul.f32 %v313_v9, %v277_v8  ;;  %124 = vst.msk [vmem:[#allocation3] sm:$0xff] %vm123_vm2, %v313_v9 }
  0xd8   :  { %v133_v11 = vsel %vm123_vm2, %v132_v10, 0.0 }
  0xd9   :  { %134 = vadd.xlane.f32.xlu0 %v133_v11 }
 0x162   :  { %v135_v17 = vpop.xlane.xlu0 %134 }
 0x163   :  { %v138_v19 = vadd.f32 %v137_v16, %v135_v17 }
 0x165   :  { %140 = vst.msk [vmem:[%s487_s10] sm:$0xff] %vm139_vm3, %v138_v19  ;;  %v148_v21 = vmul.f32 %v278_v18, %v138_v19 }
 0x167   :  { %v156_v22 = vadd.f32 %v279_v20, %v148_v21 }
 0x169   :  { %314 = vtanh.f32 %v156_v22 }
 0x176   :  { %v315_v23 = vpop.eup %314 }
 0x177   :  { %306 = vmatmul.mubr.msk.f32.vlgmr.msra.gmra.mxu1 %vm123_vm2, %v315_v23 }
 0x178   :  { %327 = shalt.err (!%p324_p4)
}
 0x179   :  { %252 = dma.vmem_to_hbm [thread:$0]  %s250_s19, 128, %s486_s9, [#allocation4]   ;;  %v280_v24 = vld [vmem:[%s485_s8] ss:$0 sm:$0xff] }
 0x17a   :  { %s363_s22 = smov [#allocation5]  }
 0x17b   :  { %s261_s23 = sshll.u32 %s363_s22, 4  ;;  %s262_s23 = int_to_ptr.vmem [resolvable:$true] %s261_s23 }
 0x17c   :  { %s336_s24 = scalar_lea.vmem %s262_s23, 128  ;;  %p341_p6 = scmp.lt.s32.totalorder %s262_s23, %s262_s23 }
 0x17d   :  { %p337_p5 = scmp.ne.s32.totalorder %s262_s23, %s336_s24  ;;  %p342_p7 = scmp.lt.s32.totalorder %s336_s24, %s336_s24 }
 0x17f   :  { %p343_p8 = por %p342_p7, %p341_p6 }
 0x181   :  { %p344_p9 = pnand %p343_p8, %p337_p5 }
 0x237   :  { %v238_v25 = vpop.f32.mrf.mxu1 }
 0x238   :  { %v239_v26 = vadd.f32 %v280_v24, %v238_v25 }
 0x239   :  { %v307_v27 = vpop.f32.mrf.mxu1 }
 0x23a   :  { %242 = vst.msk [vmem:[#allocation5] sm:$0xff] %vm48_vm1, %v239_v26 }
 0x23b   :  { %347 = shalt.err (!%p344_p9)
}
 0x23c   :  { %264 = dma.vmem_to_hbm [thread:$0]  %s262_s23, 128, %s488_s11, [#allocation6]  }
 0x23d   :  { %356 = dma.done.wait [#allocation4], 128  }
 0x23e   :  { %357 = vsyncadd [#allocation4], 4294967168 }
 0x23f   :  { %358 = dma.done.wait [#allocation6], 128  }
 0x240   :  { %359 = vsyncadd [#allocation6], 4294967168 }
 0x241   :  { %273 = vsyncpa [#allocation4], 1 }
 0x242   :  { %274 = vsyncpa [#allocation6], 1 }

</bundles_post_ra>
